<compile_context>
chip_gen: v6e
topology: v6e:2x2x1
jax: 0.10.0
libtpu: 0.0.40
codegen_flags: <defaults>
</compile_context>

<pallas_src>
import jax
import jax.numpy as jnp
from jax.experimental import pallas as pl
from jax.experimental.pallas import tpu as pltpu


def _pick_tile(dim, preferred):
    """Largest preferred tile that divides dim, else full extent (always legal)."""
    for t in preferred:
        if dim % t == 0:
            return t
    return dim


def _linear_kernel(x_ref, wt_ref, b_ref, o_ref, acc_ref):
    k = pl.program_id(2)

    @pl.when(k == 0)
    def _():
        acc_ref[...] = jnp.zeros_like(acc_ref)

    acc_ref[...] += jnp.dot(
        x_ref[...], wt_ref[...], preferred_element_type=jnp.float32
    )

    @pl.when(k == pl.num_programs(2) - 1)
    def _():
        o_ref[...] = (acc_ref[...] + b_ref[...]).astype(o_ref.dtype)


def linear_pallas(x2d, wt, b2d, *, tm=None, tn=None, tk=None):
    """y = x2d @ wt + b2d  (wt is the pre-transposed weight, shape [in, out]).

    x2d: (B, K) float32
    wt:  (K, N) float32   (= torch weight.T, precomputed once)
    b2d: (1, N) float32
    """
    B, K = x2d.shape
    K2, N = wt.shape
    assert K == K2 and b2d.shape == (1, N)

    # Pad batch rows to a multiple of 8 so the M block is (8,128)-tile legal.
    pad_b = max(8, ((B + 7) // 8) * 8)
    if pad_b != B:
        x2d = jnp.pad(x2d, ((0, pad_b - B), (0, 0)))

    # Tile selection: 256-wide N fills v6e/v7x MXU; falls back to 128 for v5e
    # friendly shapes or full extent for tiny dims.
    tm = tm or min(pad_b, 128)
    tn = tn or _pick_tile(N, (256, 128))
    tk = tk or _pick_tile(K, (512, 256, 128))

    grid = (pad_b // tm, N // tn, K // tk)

    # VMEM budget: double-buffered x/W/bias/out tiles + f32 accumulator.
    tile_bytes = 4 * (2 * (tm * tk + tk * tn + tn + tm * tn) + tm * tn)
    vmem_limit = int(min(max(tile_bytes + (4 << 20), 16 << 20), 32 << 20))

    cost = pl.CostEstimate(
        flops=2 * pad_b * K * N,
        transcendentals=0,
        bytes_accessed=4 * (pad_b * K + K * N + N + pad_b * N),
    )

    out = pl.pallas_call(
        _linear_kernel,
        out_shape=jax.ShapeDtypeStruct((pad_b, N), x2d.dtype),
        grid=grid,
        in_specs=[
            pl.BlockSpec((tm, tk), lambda i, j, k: (i, k)),   # x tile
            pl.BlockSpec((tk, tn), lambda i, j, k: (k, j)),   # W^T tile (streamed)
            pl.BlockSpec((1, tn), lambda i, j, k: (0, j)),    # bias tile
        ],
        out_specs=pl.BlockSpec((tm, tn), lambda i, j, k: (i, j)),
        scratch_shapes=[pltpu.VMEM((tm, tn), jnp.float32)],
        compiler_params=pltpu.CompilerParams(
            dimension_semantics=("parallel", "parallel", "arbitrary"),
            vmem_limit_bytes=vmem_limit,
        ),
        cost_estimate=cost,
    )(x2d, wt, b2d)

    return out[:B] if pad_b != B else out


class LinearRegressionModelPallas:
    """Mirrors the PyTorch module: Linear(in_dim, in_dim), reshape to out_dim."""

    def __init__(self, in_dim, out_dim, key):
        self.in_dim = in_dim
        self.out_dim = tuple(out_dim)
        kw, kb = jax.random.split(key)
        # Deterministic init (uniform +/- 1/sqrt(in_dim)); torch's exact
        # kaiming_uniform init differs slightly but is irrelevant to the kernel.
        bound = 1.0 / jnp.sqrt(jnp.float32(in_dim))
        self.weight = jax.random.uniform(
            kw, (in_dim, in_dim), jnp.float32, minval=-bound, maxval=bound)
        self.bias = jax.random.uniform(
            kb, (in_dim,), jnp.float32, minval=-bound, maxval=bound)
        # Hoisted out of the per-call path (no per-forward HBM transpose).
        self.wt = jnp.asarray(self.weight.T)            # (in, out)
        self.b2d = self.bias.reshape(1, in_dim)         # 2-D for VMEM layout

    def __call__(self, x):
        B = x.shape[0]
        x2d = x.reshape(B, -1)                          # x.view(B, -1)
        y = linear_pallas(x2d, self.wt, self.b2d)
        return y.reshape(B, *self.out_dim)              # x.view(B, *out_dim)


if __name__ == "__main__":
    key = jax.random.PRNGKey(0)
    k_x, k_params = jax.random.split(key)

    # Small NCHW-style input: (B=2, C=4, H=16, W=16) -> in_dim = 1024
    B, C, H, W = 2, 4, 16, 16
    in_dim = C * H * W
    out_dim = (C, H, W)  # must multiply to in_dim since Linear is in_dim -> in_dim

    x = jax.random.normal(k_x, (B, C, H, W), dtype=jnp.float32)

    model = LinearRegressionModelPallas(in_dim, out_dim, k_params)
    y = model(x)
    y = jax.block_until_ready(y)

    # Reference check in plain JAX.
    x2d = x.reshape(B, -1)
    y_ref = (x2d @ model.weight.T + model.bias).reshape(B, *out_dim)
    assert y.shape == (B, *out_dim), y.shape
    assert jnp.allclose(y, y_ref, atol=1e-4, rtol=1e-4), "mismatch vs reference"

    print("KERNEL_OK")
</pallas_src>

<mosaic_0001>
module attributes {stable_mosaic.version = 11 : i64} {
  func.func @_linear_kernel(%arg0: i32, %arg1: i32, %arg2: i32, %arg3: memref<8x512xf32, #tpu.memory_space<vmem>>, %arg4: memref<512x256xf32, #tpu.memory_space<vmem>>, %arg5: memref<1x256xf32, #tpu.memory_space<vmem>>, %arg6: memref<8x256xf32, #tpu.memory_space<vmem>>, %arg7: memref<8x256xf32, #tpu.memory_space<vmem>>) attributes {dimension_semantics = [#tpu.dimension_semantics<parallel>, #tpu.dimension_semantics<parallel>, #tpu.dimension_semantics<arbitrary>], iteration_bounds = array<i64: 1, 4, 2>, scalar_prefetch = 0 : i64, scratch_operands = 1 : i64, tpu.core_type = #tpu.core_type<tc>, window_params = [{transform_indices = @transform_0, window_bounds = array<i64: 8, 512>}, {transform_indices = @transform_1, window_bounds = array<i64: 512, 256>}, {transform_indices = @transform_2, window_bounds = array<i64: 1, 256>}, {transform_indices = @transform_3, window_bounds = array<i64: 8, 256>}]} {
    %c0_i32 = arith.constant 0 : i32
    %0 = arith.cmpi eq, %arg2, %c0_i32 : i32
    %1 = arith.extui %0 : i1 to i32
    %c0_i32_0 = arith.constant 0 : i32
    %2 = arith.cmpi ne, %1, %c0_i32_0 : i32
    scf.if %2 {
      %cst_9 = arith.constant 0.000000e+00 : f32
      %12 = vector.broadcast %cst_9 : f32 to vector<8x256xf32>
      %c0_10 = arith.constant 0 : index
      %c0_11 = arith.constant 0 : index
      %13 = vector.load %arg7[%c0_10, %c0_11] : memref<8x256xf32, #tpu.memory_space<vmem>>, vector<8x256xf32>
      tpu.vector_store %arg7[%c0_10, %c0_11], %12 {strides = array<i32>} : memref<8x256xf32, #tpu.memory_space<vmem>>, vector<8x256xf32>,
    } else {
    }
    %c0 = arith.constant 0 : index
    %c0_1 = arith.constant 0 : index
    %3 = vector.load %arg7[%c0, %c0_1] : memref<8x256xf32, #tpu.memory_space<vmem>>, vector<8x256xf32>
    %c0_2 = arith.constant 0 : index
    %c0_3 = arith.constant 0 : index
    %4 = vector.load %arg3[%c0_2, %c0_3] : memref<8x512xf32, #tpu.memory_space<vmem>>, vector<8x512xf32>
    %c0_4 = arith.constant 0 : index
    %c0_5 = arith.constant 0 : index
    %5 = vector.load %arg4[%c0_4, %c0_5] : memref<512x256xf32, #tpu.memory_space<vmem>>, vector<512x256xf32>
    %cst = arith.constant dense<0.000000e+00> : vector<8x256xf32>
    %6 = tpu.matmul %4, %5, %cst {dimension_numbers = #tpu.dot_dimension_numbers<[1], [0], [0], [1], [0, 0, 1, 1], [], []>} : vector<8x512xf32>, vector<512x256xf32>, vector<8x256xf32> -> vector<8x256xf32>
    %7 = arith.addf %3, %6 : vector<8x256xf32>
    %c0_6 = arith.constant 0 : index
    %c0_7 = arith.constant 0 : index
    %8 = vector.load %arg7[%c0_6, %c0_7] : memref<8x256xf32, #tpu.memory_space<vmem>>, vector<8x256xf32>
    tpu.vector_store %arg7[%c0_6, %c0_7], %7 {strides = array<i32>} : memref<8x256xf32, #tpu.memory_space<vmem>>, vector<8x256xf32>,
    %c1_i32 = arith.constant 1 : i32
    %9 = arith.cmpi eq, %arg2, %c1_i32 : i32
    %10 = arith.extui %9 : i1 to i32
    %c0_i32_8 = arith.constant 0 : i32
    %11 = arith.cmpi ne, %10, %c0_i32_8 : i32
    scf.if %11 {
      %c0_9 = arith.constant 0 : index
      %c0_10 = arith.constant 0 : index
      %12 = vector.load %arg7[%c0_9, %c0_10] : memref<8x256xf32, #tpu.memory_space<vmem>>, vector<8x256xf32>
      %c0_11 = arith.constant 0 : index
      %c0_12 = arith.constant 0 : index
      %13 = vector.load %arg5[%c0_11, %c0_12] : memref<1x256xf32, #tpu.memory_space<vmem>>, vector<1x256xf32>
      %14 = vector.broadcast %13 : vector<1x256xf32> to vector<8x256xf32>
      %15 = arith.addf %12, %14 : vector<8x256xf32>
      %c0_13 = arith.constant 0 : index
      %c0_14 = arith.constant 0 : index
      %16 = vector.load %arg6[%c0_13, %c0_14] : memref<8x256xf32, #tpu.memory_space<vmem>>, vector<8x256xf32>
      tpu.vector_store %arg6[%c0_13, %c0_14], %15 {strides = array<i32>} : memref<8x256xf32, #tpu.memory_space<vmem>>, vector<8x256xf32>,
    } else {
    }
    return
  }
  func.func @transform_0(%arg0: i32, %arg1: i32, %arg2: i32) -> (i32, i32) {
    %c0_i32 = arith.constant 0 : i32
    return %arg0, %arg2 : i32, i32
  }
  func.func @transform_1(%arg0: i32, %arg1: i32, %arg2: i32) -> (i32, i32) {
    %c0_i32 = arith.constant 0 : i32
    return %arg2, %arg1 : i32, i32
  }
  func.func @transform_2(%arg0: i32, %arg1: i32, %arg2: i32) -> (i32, i32) {
    %c0_i32 = arith.constant 0 : i32
    %c0_i32_0 = arith.constant 0 : i32
    return %c0_i32, %arg1 : i32, i32
  }
  func.func @transform_3(%arg0: i32, %arg1: i32, %arg2: i32) -> (i32, i32) {
    %c0_i32 = arith.constant 0 : i32
    return %arg0, %arg1 : i32, i32
  }
}

</mosaic_0001>

<bundles_post_ra>
// kernel: tpu_custom_call.1
= control target key start
LH: loop header
LB: loop body
LE: loop exit
PB: predicated region body
PF: predicated region fallthrough
CT: control target
= control target key end

     0   :  { %s1654_s0 = inlined_call_operand.hbm [shape: f32[8,1024], index: 0, kind: input, shape index: {}]   ;;  %s1655_s1 = inlined_call_operand.hbm [shape: f32[1024,1024], index: 1, kind: input, shape index: {}]   ;;  %s1656_s2 = inlined_call_operand.hbm [shape: f32[1,1024], index: 2, kind: input, shape index: {}]   ;;  %s1657_s3 = inlined_call_operand.hbm [shape: f32[8,1024], index: 3, kind: output, shape index: {}]  }
   0x1   :  { %1663 = sst [smem:[#allocation20_spill]] %s1654_s0 }
   0x2   :  { %1664 = sst [smem:[#allocation21_spill]] %s1655_s1 }
   0x3   :  { %1665 = sst [smem:[#allocation22_spill]] %s1656_s2 }
   0x4   :  { %1666 = sst [smem:[#allocation23_spill]] %s1657_s3 }
   0x5   :  { %8 = vsyncpa [#allocation4], 0 }
   0x6   :  { %10 = vsyncpa [#allocation4 + $0x1], 0 }
   0x7   :  { %11 = vsyncpa [#allocation7], 0 }
   0x8   :  { %13 = vsyncpa [#allocation7 + $0x1], 0 }
   0x9   :  { %14 = vsyncpa [#allocation5], 0 }
   0xa   :  { %16 = vsyncpa [#allocation5 + $0x1], 0  ;;  %s1195_s12 = smov 0   ;;  %s1197_s13 = smov 0  }
   0xb   :  { %s1199_s14 = smov 0   ;;  %s1201_s15 = smov 0  }
   0xc   :  { %s1203_s16 = smov 0   ;;  %s1205_s17 = smov 0  }
   0xd   :  { %s1207_s18 = smov 0   ;;  %s1209_s19 = smov 0  }
   0xe   :  { %s1211_s20 = smov 0   ;;  %s1213_s21 = smov 0  }
   0xf   :  { %s1215_s22 = smov 0   ;;  %s1217_s23 = smov 0  }
  0x10   :  { %s1219_s24 = smov 0   ;;  %s1221_s25 = smov 0  }
  0x11 LB: > { %1667 = sst [smem:[#allocation14_spill]] %s1113_s12  ;;  %s34_s26 = sadd.s32 1, %s1157_s23  ;;  %s1165_s25 = sphi %s1221_s25, %s22_s25   ;;  %s1161_s24 = sphi %s1219_s24, %s1711_s24   ;;  %s1157_s23 = sphi %s1217_s23, %s1710_s23   ;;  %s1153_s22 = sphi %s1215_s22, %s1709_s22   ;;  %s1149_s21 = sphi %s1213_s21, %s1708_s21   ;;  %s1145_s20 = sphi %s1211_s20, %s1707_s20   ;;  %s1141_s19 = sphi %s1209_s19, %s1706_s19   ;;  %s1137_s18 = sphi %s1207_s18, %s1705_s18   ;;  %s1133_s17 = sphi %s1205_s17, %s1704_s17   ;;  %s1129_s16 = sphi %s1203_s16, %s1703_s16   ;;  %s1125_s15 = sphi %s1201_s15, %s1702_s15   ;;  %s1121_s14 = sphi %s1199_s14, %s1701_s14   ;;  %s1117_s13 = sphi %s1197_s13, %s1700_s13   ;;  %s1113_s12 = sphi %s1195_s12, %s1697_s12  }
  0x12   : > { %1668 = sst [smem:[#allocation15_spill]] %s1117_s13  ;;  %s37_s27 = sadd.s32 1, %s1161_s24 }
  0x13   : > { %1669 = sst [smem:[#allocation16_spill]] %s1149_s21  ;;  %p35_p0 = scmp.ge.s32.totalorder %s34_s26, 2 }
  0x14   : > { %1670 = sst [smem:[#allocation17_spill]] %s1153_s22  ;;  %p58_p1 = scmp.eq.s32.totalorder %s1165_s25, 0 }
  0x15   : > { %s78_s28 = sadd.s32 1, %s1133_s17  ;;  %p85_p2 = scmp.ne.s32.totalorder %s1133_s17, %s1129_s16 }
  0x16   : > { %s1713_s26 = smov (%p35_p0, %s34_s26), 0  ;;  %s1715_s27 = smov (!%p35_p0, %s37_s27), %s1161_s24 }
  0x17   : > { %1671 = sst [smem:[#allocation18_spill]] %s1713_s26  ;;  %s1276_s29 = ssub.s32 %s1157_s23, %s1713_s26 }
  0x18   : > { %p1280_p3 = por %p85_p2, %p58_p1  ;;  %p39_p4 = scmp.ge.s32.totalorder %s1715_s27, 4 }
  0x19   : > { %p91_p5 = scmp.ne.s32.totalorder %s1129_s16, %s1125_s15  ;;  %p1662_p6 = scmp.lt.s32.totalorder %s1165_s25, 8 }
  0x1a   : > { %s1717_s27 = smov (%p39_p4, %s1715_s27), 0  ;;  %s785_s4 = sshll.u32 %s1157_s23, 9 }
  0x1b   : > { %1673 = sst [smem:[#allocation19_spill]] %s1717_s27  ;;  %s190_s5 = sand.u32 1, %s1165_s25  }
  0x1c   : > { %s1293_s6 = ssub.s32 %s1161_s24, %s1717_s27  ;;  %s192_s8 = sand.u32 1, %s1133_s17  }
  0x1d   : > { %s75_s7 = sor.u32 %s1293_s6, %s1276_s29  ;;  %s765_s9 = sshll.u32 %s192_s8, 10 }
  0x1e   : > { %p76_p7 = scmp.eq.s32.totalorder %s75_s7, 0  ;;  %s767_s10 = sshll.u32 %s1161_s24, 1 }
  0x1f   : > { %s201_s26 = sadd.s32 %s785_s4, %s767_s10  ;;  %s194_s3 = scalar_lea.vmem [#allocation6], %s765_s9 }
  0x20   : > { %s1300_s11 = scalar_select %p76_p7, %s1133_s17, %s78_s28  }
  0x21   : > { %s204_s22 = sshll.u32 %s194_s3, 4  ;;  %s769_s21 = sshll.u32 %s201_s26, 7  ;;  %s205_s22 = int_to_ptr.vmem [resolvable:$true] %s204_s22 }
  0x22   : > { %s1674_s1 = sld [smem:[#allocation21_spill]]  ;;  %p1311_p8 = pnand %p1662_p6, %p1280_p3 }
  0x23   : > { %s1315_s7 = scalar_lea.sflag [#allocation7], %s190_s5  ;;  %s942_s28 = scalar_lea.vmem %s205_s22, 16384 }
  0x24   : > { %p931_p9 = pneg %p1311_p8  ;;  %p943_p10 = scmp.ne.s32.totalorder %s205_s22, %s942_s28 }
  0x25   : > { %s1167_s3 = smov [#allocation6]  }
  0x26   : > { %p945_p11 = pnand %p943_p10, %p931_p9  ;;  %s947_s26 = sshll.u32 %s1167_s3, 4  ;;  %s948_s26 = int_to_ptr.vmem [resolvable:$false] %s947_s26 }
  0x27   : > { %s949_s2 = scalar_lea.vmem %s948_s26, 32768  ;;  %p950_p13 = scmp.lt.s32.totalorder %s205_s22, %s948_s26 }
  0x28   : > { %s203_s13 = scalar_lea.hbm %s1674_s1, %s769_s21  ;;  %p946_p12 = pneg %p945_p11 }
  0x29   : > { %p951_p0 = scmp.lt.s32.totalorder %s949_s2, %s942_s28 }
  0x2b   : > { %p952_p2 = por %p951_p0, %p950_p13 }
  0x2d   : > { %p953_p3 = pnand %p952_p2, %p946_p12 }
  0x2f   : > { %956 = shalt.err (!%p953_p3)
}
  0x30   : > { %s1168_s12 = smov 1024   ;;  %s1169_s21 = smov 256  }
  0x31   : > { %s1170_s30 = smov 16   ;;  %p773_p4 = scmp.ge.s32.totalorder %s1165_s25, 1 }
  0x32   : > { %803 = dma.hbm_to_vmem [thread:$0]  (!%p1311_p8), %s203_s13, 16384, %s205_s22, %s1315_s7, %s1168_s12, %s1169_s21, %s1170_s30  }
  0x33   : > { %p231_p7 = scmp.lt.s32.totalorder %s1165_s25, 9  ;;  %s1329_s8 = sadd.s32 4294967295, %s1165_s25  }
  0x34   : > { %p48_p10 = scmp.eq.s32.totalorder %s1276_s29, 0  ;;  %s50_s9 = sadd.s32 1, %s1145_s20 }
  0x35   : > { %p1324_p9 = pnand %p773_p4, %p231_p7  ;;  %p57_p11 = scmp.ne.s32.totalorder %s1145_s20, %s1141_s19 }
  0x36   : > { %p63_p12 = scmp.ne.s32.totalorder %s1141_s19, %s1137_s18  ;;  %p64_p13 = scmp.eq.s32.totalorder %s1329_s8, 0 }
  0x37   : > { %s1338_s27 = scalar_select %p48_p10, %s1145_s20, %s50_s9  }
  0x38   : > { %p59_p8 = por %p58_p1, %p57_p11  ;;  %s169_s13 = sand.u32 1, %s1145_s20  }
  0x39   : > { %s1677_s0 = sld [smem:[#allocation20_spill]]  ;;  %p1351_p0 = por %p64_p13, %p63_p12 }
  0x3a   : > { %p1360_p2 = por %p91_p5, %p64_p13  ;;  %s762_s29 = sshll.u32 %s169_s13, 5 }
  0x3b   : > { %p1366_p3 = pnand %p1662_p6, %p59_p8  ;;  %s173_s2 = scalar_lea.vmem [#allocation3], %s762_s29 }
  0x3c   : > { %s170_s12 = scalar_lea.sflag [#allocation4], %s169_s13  ;;  %s1171_s15 = smov [#allocation3]  }
  0x3d   : > { %p959_p4 = pneg %p1366_p3  ;;  %s975_s30 = sshll.u32 %s1171_s15, 4  ;;  %s976_s30 = int_to_ptr.vmem [resolvable:$false] %s975_s30 }
  0x3e   : > { %s977_s9 = scalar_lea.vmem %s976_s30, 1024 }
  0x3f   : > { %s181_s28 = scalar_lea.hbm %s1677_s0, %s785_s4  ;;  %s183_s4 = sshll.u32 %s173_s2, 4  ;;  %s184_s4 = int_to_ptr.vmem [resolvable:$true] %s183_s4 }
  0x40   : > { %s970_s21 = scalar_lea.vmem %s184_s4, 512  ;;  %p978_p11 = scmp.lt.s32.totalorder %s184_s4, %s976_s30 }
  0x41   : > { %p971_p7 = scmp.ne.s32.totalorder %s184_s4, %s970_s21  ;;  %p979_p12 = scmp.lt.s32.totalorder %s977_s9, %s970_s21 }
  0x43   : > { %p973_p10 = pnand %p971_p7, %p959_p4  ;;  %p980_p8 = por %p979_p12, %p978_p11 }
  0x45   : > { %p974_p5 = pneg %p973_p10 }
  0x47   : > { %p981_p6 = pnand %p980_p8, %p974_p5 }
  0x49   : > { %984 = shalt.err (!%p981_p6)
}
  0x4a   : > { %s1681_s13 = sld [smem:[#allocation15_spill]]  ;;  %s759_s10 = sadd.s32 4294967294, %s1165_s25  }
  0x4b   : > { %s1682_s22 = sld [smem:[#allocation14_spill]]  ;;  %p102_p4 = scmp.eq.s32.totalorder %s1293_s6, 0 }
  0x4c   : > { %800 = dma.hbm_to_vmem [thread:$0]  (!%p1366_p3), %s181_s28, 512, %s184_s4, %s170_s12  }
  0x4d   : > { %s104_s29 = sadd.s32 1, %s1121_s14  ;;  %p143_p11 = scmp.eq.s32.totalorder %s1329_s8, 7 }
  0x4e   : > { %s1382_s26 = scalar_select %p102_p4, %s1121_s14, %s104_s29  }
  0x4f   : > { %p149_p12 = scmp.eq.s32.totalorder %s759_s10, 7  ;;  %s216_s21 = sand.u32 1, %s1121_s14  }
  0x50   : > { %p111_p6 = scmp.ne.s32.totalorder %s1121_s14, %s1681_s13  ;;  %s787_s15 = sshll.u32 %s1161_s24, 5 }
  0x51   : > { %p117_p7 = scmp.ne.s32.totalorder %s1681_s13, %s1682_s22  ;;  %s770_s4 = sshll.u32 %s216_s21, 1 }
  0x52   : > { %p113_p10 = por %p111_p6, %p58_p1  ;;  %p1395_p3 = por %p143_p11, %p111_p6 }
  0x53   : > { %p1388_p5 = por %p117_p7, %p64_p13  ;;  %p1399_p8 = por %p149_p12, %p117_p7 }
  0x54   : > { %s1686_s9 = sld [smem:[#allocation22_spill]]  ;;  %p1687_p1 = scmp.lt.s32.totalorder %s1165_s25, 8 }
  0x55   : > { %s1685_s6 = scalar_select %p1399_p8, 1, 0 }
  0x56   : > { %p1408_p13 = pnand %p1687_p1, %p113_p10  ;;  %s218_s10 = scalar_lea.vmem [#allocation8], %s770_s4 }
  0x57   : > { %s226_s29 = sshll.u32 %s218_s10, 4  ;;  %s1172_s21 = smov [#allocation8]   ;;  %s227_s29 = int_to_ptr.vmem [resolvable:$true] %s226_s29 }
  0x58   : > { %p987_p4 = pneg %p1408_p13  ;;  %s998_s0 = scalar_lea.vmem %s227_s29, 32 }
  0x59   : > { %p999_p6 = scmp.ne.s32.totalorder %s227_s29, %s998_s0  ;;  %s1003_s1 = sshll.u32 %s1172_s21, 4  ;;  %s1004_s1 = int_to_ptr.vmem [resolvable:$false] %s1003_s1 }
  0x5a   : > { %s224_s13 = scalar_lea.hbm %s1686_s9, %s787_s15  ;;  %s1005_s12 = scalar_lea.vmem %s1004_s1, 64 }
  0x5b   : > { %p1001_p7 = pnand %p999_p6, %p987_p4  ;;  %p1006_p12 = scmp.lt.s32.totalorder %s227_s29, %s1004_s1 }
  0x5c   : > { %p1007_p8 = scmp.lt.s32.totalorder %s1005_s12, %s998_s0 }
  0x5d   : > { %p1002_p11 = pneg %p1001_p7 }
  0x5e   : > { %p1008_p10 = por %p1007_p8, %p1006_p12 }
  0x60   : > { %p1009_p1 = pnand %p1008_p10, %p1002_p11 }
  0x62   : > { %1012 = shalt.err (!%p1009_p1)
}
  0x63   : > { %806 = dma.hbm_to_vmem [thread:$0]  (!%p1408_p13), %s224_s13, 32, %s227_s29, %s1315_s7  }
  0x64   : > { %235 = sbr.rel (%p1324_p9) target bundleno = 437 (0x1b5), region = 32  ;;  %s237_s15 = sand.u32 (!%p1324_p9), 1, %s1141_s19  }
  0x65   : > { %s774_s4 = sshll.u32 (!%p1324_p9), %s237_s15, 5  ;;  %s238_s30 = scalar_lea.sflag (!%p1324_p9), [#allocation4], %s237_s15 }
  0x66   : > { %s1420_s9 = scalar_lea.vmem (!%p1324_p9), [#allocation3], %s774_s4 }
  0x69   : > { %1096 = dma.done.wait (%p1351_p0), %s238_s30, 512  }
  0x6a   : > { %1098 = vsyncadd (%p1351_p0), %s238_s30, 4294966784  ;;  %s246_s0 = sand.u32 1, %s1329_s8   ;;  %s248_s1 = sand.u32 1, %s1129_s16  }
  0x6b   : > { %s775_s7 = sshll.u32 %s248_s1, 10  ;;  %s247_s5 = scalar_lea.sflag [#allocation7], %s246_s0 }
  0x6c   : > { %s1428_s13 = scalar_lea.vmem [#allocation6], %s775_s7 }
  0x6d   : > { %1100 = dma.done.wait (%p1360_p2), %s247_s5, 16384  }
  0x6e   : > { %1102 = vsyncadd (%p1360_p2), %s247_s5, 4294950912  ;;  %s1689_s22 = sld [smem:[#allocation15_spill]] }
  0x74   : > { %s1435_s10 = sand.u32 1, %s1689_s22  }
  0x75   : > { %s776_s3 = sshll.u32 %s1435_s10, 1 }
  0x76   : > { %s1438_s29 = scalar_lea.vmem [#allocation8], %s776_s3 }
  0x77   : > { %1104 = dma.done.wait (%p1388_p5), %s247_s5, 32  }
  0x78   : > { %1106 = vsyncadd (%p1388_p5), %s247_s5, 4294967264  ;;  %s777_s8 = sshll.u32 %s1435_s10, 4  ;;  %s1690_s12 = sld [smem:[#allocation16_spill]] }
  0x79   : > { %s1445_s21 = scalar_lea.vmem [#allocation9], %s777_s8 }
  0x7e   : > { %p778_p9 = scmp.ne.s32.totalorder %s1690_s12, 0 }
  0x80   : > { %300 = sbr.rel (%p778_p9) target bundleno = 135 (0x87), region = 48 }
  0x85   : > { %v1173_v0 = vmov 0.0  }
  0x86   : > { %301 = vst [vmem:[#allocation2] sm:$0xff] %v1173_v0  ;;  %302 = vst [vmem:[#allocation2 + $0x8] sm:$0xff] %v1173_v0 }
  0x87 PF: > { %v340_v1 = vld [vmem:[%s1428_s13 + $0xf8] sm:$0xff]  ;;  %v339_v3 = vld [vmem:[%s1428_s13 + $0xf0] sm:$0xff]  ;;  %v338_v5 = vld [vmem:[%s1428_s13 + $0xe8] sm:$0xff]  ;;  %s1691_s18 = sld [smem:[#allocation16_spill]] }
  0x88   : > { %v404_v2 = vld [vmem:[%s1428_s13 + $0x2f8] sm:$0xff]  ;;  %437 = vmatprep.subr.mxu0 %v340_v1  ;;  %v403_v4 = vld [vmem:[%s1428_s13 + $0x2f0] sm:$0xff]  ;;  %v402_v6 = vld [vmem:[%s1428_s13 + $0x2e8] sm:$0xff] }
  0x89   : > { %508 = vmatprep.subr.mxu1 %v404_v2  ;;  %438 = vmatpush1.msra.mxu0 %v339_v3  ;;  %v337_v7 = vld [vmem:[%s1428_s13 + $0xe0] sm:$0xff]  ;;  %v336_v9 = vld [vmem:[%s1428_s13 + $0xd8] sm:$0xff]  ;;  %v335_v11 = vld [vmem:[%s1428_s13 + $0xd0] sm:$0xff] }
  0x8a   : > { %509 = vmatpush1.msra.mxu1 %v403_v4  ;;  %v401_v8 = vld [vmem:[%s1428_s13 + $0x2e0] sm:$0xff]  ;;  %439 = vmatprep.subr.mxu0 %v338_v5  ;;  %v400_v10 = vld [vmem:[%s1428_s13 + $0x2d8] sm:$0xff]  ;;  %v399_v12 = vld [vmem:[%s1428_s13 + $0x2d0] sm:$0xff] }
  0x8b   : > { %510 = vmatprep.subr.mxu1 %v402_v6  ;;  %440 = vmatpush1.msra.mxu0 %v337_v7  ;;  %v334_v13 = vld [vmem:[%s1428_s13 + $0xc8] sm:$0xff]  ;;  %v333_v15 = vld [vmem:[%s1428_s13 + $0xc0] sm:$0xff]  ;;  %v332_v17 = vld [vmem:[%s1428_s13 + $0xb8] sm:$0xff] }
  0x8c   : > { %511 = vmatpush1.msra.mxu1 %v401_v8  ;;  %v398_v14 = vld [vmem:[%s1428_s13 + $0x2c8] sm:$0xff]  ;;  %441 = vmatprep.subr.mxu0 %v336_v9  ;;  %v397_v16 = vld [vmem:[%s1428_s13 + $0x2c0] sm:$0xff]  ;;  %v396_v18 = vld [vmem:[%s1428_s13 + $0x2b8] sm:$0xff] }
  0x8d   : > { %512 = vmatprep.subr.mxu1 %v400_v10  ;;  %442 = vmatpush1.msra.mxu0 %v335_v11  ;;  %v331_v19 = vld [vmem:[%s1428_s13 + $0xb0] sm:$0xff]  ;;  %v330_v21 = vld [vmem:[%s1428_s13 + $0xa8] sm:$0xff]  ;;  %v329_v23 = vld [vmem:[%s1428_s13 + $0xa0] sm:$0xff]  ;;  %p779_p0 = scmp.ne.s32.totalorder %s1691_s18, 1 }
  0x8e   : > { %513 = vmatpush1.msra.mxu1 %v399_v12  ;;  %443 = vmatprep.subr.mxu0 %v334_v13  ;;  %v395_v20 = vld [vmem:[%s1428_s13 + $0x2b0] sm:$0xff]  ;;  %v394_v22 = vld [vmem:[%s1428_s13 + $0x2a8] sm:$0xff]  ;;  %v393_v24 = vld [vmem:[%s1428_s13 + $0x2a0] sm:$0xff] }
  0x8f   : > { %514 = vmatprep.subr.mxu1 %v398_v14  ;;  %444 = vmatpush1.msra.mxu0 %v333_v15  ;;  %v328_v25 = vld [vmem:[%s1428_s13 + $0x98] sm:$0xff]  ;;  %v327_v27 = vld [vmem:[%s1428_s13 + $0x90] sm:$0xff]  ;;  %v326_v29 = vld [vmem:[%s1428_s13 + $0x88] sm:$0xff] }
  0x90   : > { %515 = vmatpush1.msra.mxu1 %v397_v16  ;;  %445 = vmatprep.subr.mxu0 %v332_v17  ;;  %v392_v26 = vld [vmem:[%s1428_s13 + $0x298] sm:$0xff]  ;;  %v391_v28 = vld [vmem:[%s1428_s13 + $0x290] sm:$0xff]  ;;  %v390_v30 = vld [vmem:[%s1428_s13 + $0x288] sm:$0xff] }
  0x91   : > { %516 = vmatprep.subr.mxu1 %v396_v18  ;;  %446 = vmatpush1.msra.mxu0 %v331_v19  ;;  %v325_v31 = vld [vmem:[%s1428_s13 + $0x80] sm:$0xff]  ;;  %v324_v33 = vld [vmem:[%s1428_s13 + $0x78] sm:$0xff]  ;;  %v323_v35 = vld [vmem:[%s1428_s13 + $0x70] sm:$0xff] }
  0x92   : > { %517 = vmatpush1.msra.mxu1 %v395_v20  ;;  %447 = vmatprep.subr.mxu0 %v330_v21  ;;  %v389_v32 = vld [vmem:[%s1428_s13 + $0x280] sm:$0xff]  ;;  %v388_v34 = vld [vmem:[%s1428_s13 + $0x278] sm:$0xff]  ;;  %v387_v36 = vld [vmem:[%s1428_s13 + $0x270] sm:$0xff] }
  0x93   : > { %518 = vmatprep.subr.mxu1 %v394_v22  ;;  %448 = vmatpush1.msra.mxu0 %v329_v23  ;;  %v322_v37 = vld [vmem:[%s1428_s13 + $0x68] sm:$0xff]  ;;  %v321_v39 = vld [vmem:[%s1428_s13 + $0x60] sm:$0xff]  ;;  %v320_v41 = vld [vmem:[%s1428_s13 + $0x58] sm:$0xff] }
  0x94   : > { %519 = vmatpush1.msra.mxu1 %v393_v24  ;;  %449 = vmatprep.subr.mxu0 %v328_v25  ;;  %v386_v38 = vld [vmem:[%s1428_s13 + $0x268] sm:$0xff]  ;;  %v385_v40 = vld [vmem:[%s1428_s13 + $0x260] sm:$0xff]  ;;  %v384_v42 = vld [vmem:[%s1428_s13 + $0x258] sm:$0xff] }
  0x95   : > { %520 = vmatprep.subr.mxu1 %v392_v26  ;;  %450 = vmatpush1.msra.mxu0 %v327_v27  ;;  %v319_v43 = vld [vmem:[%s1428_s13 + $0x50] sm:$0xff]  ;;  %v318_v45 = vld [vmem:[%s1428_s13 + $0x48] sm:$0xff]  ;;  %v317_v47 = vld [vmem:[%s1428_s13 + $0x40] sm:$0xff] }
  0x96   : > { %521 = vmatpush1.msra.mxu1 %v391_v28  ;;  %451 = vmatprep.subr.mxu0 %v326_v29  ;;  %v383_v44 = vld [vmem:[%s1428_s13 + $0x250] sm:$0xff]  ;;  %v382_v46 = vld [vmem:[%s1428_s13 + $0x248] sm:$0xff]  ;;  %v381_v48 = vld [vmem:[%s1428_s13 + $0x240] sm:$0xff] }
  0x97   : > { %522 = vmatprep.subr.mxu1 %v390_v30  ;;  %452 = vmatpush1.msra.mxu0 %v325_v31  ;;  %v316_v49 = vld [vmem:[%s1428_s13 + $0x38] sm:$0xff]  ;;  %v315_v51 = vld [vmem:[%s1428_s13 + $0x30] sm:$0xff]  ;;  %v314_v53 = vld [vmem:[%s1428_s13 + $0x28] sm:$0xff] }
  0x98   : > { %523 = vmatpush1.msra.mxu1 %v389_v32  ;;  %453 = vmatprep.subr.mxu0 %v324_v33  ;;  %v380_v50 = vld [vmem:[%s1428_s13 + $0x238] sm:$0xff]  ;;  %v379_v52 = vld [vmem:[%s1428_s13 + $0x230] sm:$0xff]  ;;  %v378_v54 = vld [vmem:[%s1428_s13 + $0x228] sm:$0xff] }
  0x99   : > { %524 = vmatprep.subr.mxu1 %v388_v34  ;;  %454 = vmatpush1.msra.mxu0 %v323_v35  ;;  %v313_v55 = vld [vmem:[%s1428_s13 + $0x20] sm:$0xff]  ;;  %v312_v57 = vld [vmem:[%s1428_s13 + $0x18] sm:$0xff]  ;;  %v311_v59 = vld [vmem:[%s1428_s13 + $0x10] sm:$0xff] }
  0x9a   : > { %525 = vmatpush1.msra.mxu1 %v387_v36  ;;  %455 = vmatprep.subr.mxu0 %v322_v37  ;;  %v377_v56 = vld [vmem:[%s1428_s13 + $0x220] sm:$0xff]  ;;  %v376_v58 = vld [vmem:[%s1428_s13 + $0x218] sm:$0xff]  ;;  %v375_v60 = vld [vmem:[%s1428_s13 + $0x210] sm:$0xff] }
  0x9b   : > { %526 = vmatprep.subr.mxu1 %v386_v38  ;;  %456 = vmatpush1.msra.mxu0 %v321_v39  ;;  %v310_v61 = vld [vmem:[%s1428_s13 + $0x8] sm:$0xff]  ;;  %v309_v63 = vld [vmem:[%s1428_s13] sm:$0xff]  ;;  %v372_v1 = vld [vmem:[%s1428_s13 + $0x1f8] sm:$0xff] }
  0x9c   : > { %527 = vmatpush1.msra.mxu1 %v385_v40  ;;  %457 = vmatprep.subr.mxu0 %v320_v41  ;;  %v374_v62 = vld [vmem:[%s1428_s13 + $0x208] sm:$0xff]  ;;  %v373_v0 = vld [vmem:[%s1428_s13 + $0x200] sm:$0xff]  ;;  %v436_v2 = vld [vmem:[%s1428_s13 + $0x3f8] sm:$0xff] }
  0x9d   : > { %528 = vmatprep.subr.mxu1 %v384_v42  ;;  %458 = vmatpush1.msra.mxu0 %v319_v43  ;;  %v371_v3 = vld [vmem:[%s1428_s13 + $0x1f0] sm:$0xff]  ;;  %v370_v5 = vld [vmem:[%s1428_s13 + $0x1e8] sm:$0xff]  ;;  %v369_v7 = vld [vmem:[%s1428_s13 + $0x1e0] sm:$0xff] }
  0x9e   : > { %529 = vmatpush1.msra.mxu1 %v383_v44  ;;  %459 = vmatprep.subr.mxu0 %v318_v45  ;;  %v435_v4 = vld [vmem:[%s1428_s13 + $0x3f0] sm:$0xff]  ;;  %v434_v6 = vld [vmem:[%s1428_s13 + $0x3e8] sm:$0xff]  ;;  %v433_v8 = vld [vmem:[%s1428_s13 + $0x3e0] sm:$0xff] }
  0x9f   : > { %530 = vmatprep.subr.mxu1 %v382_v46  ;;  %460 = vmatpush1.msra.mxu0 %v317_v47  ;;  %v368_v9 = vld [vmem:[%s1428_s13 + $0x1d8] sm:$0xff]  ;;  %v367_v11 = vld [vmem:[%s1428_s13 + $0x1d0] sm:$0xff]  ;;  %v366_v13 = vld [vmem:[%s1428_s13 + $0x1c8] sm:$0xff] }
  0xa0   : > { %531 = vmatpush1.msra.mxu1 %v381_v48  ;;  %461 = vmatprep.subr.mxu0 %v316_v49  ;;  %v432_v10 = vld [vmem:[%s1428_s13 + $0x3d8] sm:$0xff]  ;;  %v431_v12 = vld [vmem:[%s1428_s13 + $0x3d0] sm:$0xff]  ;;  %v430_v14 = vld [vmem:[%s1428_s13 + $0x3c8] sm:$0xff] }
  0xa1   : > { %532 = vmatprep.subr.mxu1 %v380_v50  ;;  %462 = vmatpush1.msra.mxu0 %v315_v51  ;;  %v365_v15 = vld [vmem:[%s1428_s13 + $0x1c0] sm:$0xff]  ;;  %v364_v17 = vld [vmem:[%s1428_s13 + $0x1b8] sm:$0xff]  ;;  %v363_v19 = vld [vmem:[%s1428_s13 + $0x1b0] sm:$0xff] }
  0xa2   : > { %533 = vmatpush1.msra.mxu1 %v379_v52  ;;  %463 = vmatprep.subr.mxu0 %v314_v53  ;;  %v429_v16 = vld [vmem:[%s1428_s13 + $0x3c0] sm:$0xff]  ;;  %v428_v18 = vld [vmem:[%s1428_s13 + $0x3b8] sm:$0xff]  ;;  %v427_v20 = vld [vmem:[%s1428_s13 + $0x3b0] sm:$0xff] }
  0xa3   : > { %534 = vmatprep.subr.mxu1 %v378_v54  ;;  %464 = vmatpush1.msra.mxu0 %v313_v55  ;;  %v362_v21 = vld [vmem:[%s1428_s13 + $0x1a8] sm:$0xff]  ;;  %v361_v23 = vld [vmem:[%s1428_s13 + $0x1a0] sm:$0xff]  ;;  %v360_v25 = vld [vmem:[%s1428_s13 + $0x198] sm:$0xff] }
  0xa4   : > { %535 = vmatpush1.msra.mxu1 %v377_v56  ;;  %465 = vmatprep.subr.mxu0 %v312_v57  ;;  %v426_v22 = vld [vmem:[%s1428_s13 + $0x3a8] sm:$0xff]  ;;  %v425_v24 = vld [vmem:[%s1428_s13 + $0x3a0] sm:$0xff]  ;;  %v424_v26 = vld [vmem:[%s1428_s13 + $0x398] sm:$0xff] }
  0xa5   : > { %536 = vmatprep.subr.mxu1 %v376_v58  ;;  %466 = vmatpush1.msra.mxu0 %v311_v59  ;;  %v359_v27 = vld [vmem:[%s1428_s13 + $0x190] sm:$0xff]  ;;  %v358_v29 = vld [vmem:[%s1428_s13 + $0x188] sm:$0xff]  ;;  %v357_v31 = vld [vmem:[%s1428_s13 + $0x180] sm:$0xff] }
  0xa6   : > { %537 = vmatpush1.msra.mxu1 %v375_v60  ;;  %467 = vmatprep.subr.mxu0 %v310_v61  ;;  %v423_v28 = vld [vmem:[%s1428_s13 + $0x390] sm:$0xff]  ;;  %v422_v30 = vld [vmem:[%s1428_s13 + $0x388] sm:$0xff]  ;;  %v421_v32 = vld [vmem:[%s1428_s13 + $0x380] sm:$0xff] }
  0xa7   : > { %538 = vmatprep.subr.mxu1 %v374_v62  ;;  %468 = vmatpush1.msra.mxu0 %v309_v63  ;;  %v356_v33 = vld [vmem:[%s1428_s13 + $0x178] sm:$0xff]  ;;  %v355_v35 = vld [vmem:[%s1428_s13 + $0x170] sm:$0xff]  ;;  %v354_v37 = vld [vmem:[%s1428_s13 + $0x168] sm:$0xff] }
  0xa8   : > { %539 = vmatpush1.msra.mxu1 %v373_v0  ;;  %469 = vmatprep.subr.mxu0 %v372_v1  ;;  %v420_v34 = vld [vmem:[%s1428_s13 + $0x378] sm:$0xff]  ;;  %v419_v36 = vld [vmem:[%s1428_s13 + $0x370] sm:$0xff]  ;;  %v418_v38 = vld [vmem:[%s1428_s13 + $0x368] sm:$0xff] }
  0xa9   : > { %540 = vmatprep.subr.mxu1 %v436_v2  ;;  %470 = vmatpush2.msra.mxu0 %v371_v3  ;;  %v353_v39 = vld [vmem:[%s1428_s13 + $0x160] sm:$0xff]  ;;  %v352_v41 = vld [vmem:[%s1428_s13 + $0x158] sm:$0xff]  ;;  %v351_v43 = vld [vmem:[%s1428_s13 + $0x150] sm:$0xff] }
  0xaa   : > { %541 = vmatpush2.msra.mxu1 %v435_v4  ;;  %471 = vmatprep.subr.mxu0 %v370_v5  ;;  %v417_v40 = vld [vmem:[%s1428_s13 + $0x360] sm:$0xff]  ;;  %v416_v42 = vld [vmem:[%s1428_s13 + $0x358] sm:$0xff]  ;;  %v415_v44 = vld [vmem:[%s1428_s13 + $0x350] sm:$0xff] }
  0xab   : > { %542 = vmatprep.subr.mxu1 %v434_v6  ;;  %472 = vmatpush2.msra.mxu0 %v369_v7  ;;  %v350_v45 = vld [vmem:[%s1428_s13 + $0x148] sm:$0xff]  ;;  %v349_v47 = vld [vmem:[%s1428_s13 + $0x140] sm:$0xff]  ;;  %v348_v49 = vld [vmem:[%s1428_s13 + $0x138] sm:$0xff] }
  0xac   : > { %543 = vmatpush2.msra.mxu1 %v433_v8  ;;  %473 = vmatprep.subr.mxu0 %v368_v9  ;;  %v414_v46 = vld [vmem:[%s1428_s13 + $0x348] sm:$0xff]  ;;  %v413_v48 = vld [vmem:[%s1428_s13 + $0x340] sm:$0xff]  ;;  %v412_v50 = vld [vmem:[%s1428_s13 + $0x338] sm:$0xff] }
  0xad   : > { %544 = vmatprep.subr.mxu1 %v432_v10  ;;  %474 = vmatpush2.msra.mxu0 %v367_v11  ;;  %v347_v51 = vld [vmem:[%s1428_s13 + $0x130] sm:$0xff]  ;;  %v346_v53 = vld [vmem:[%s1428_s13 + $0x128] sm:$0xff]  ;;  %v345_v55 = vld [vmem:[%s1428_s13 + $0x120] sm:$0xff] }
  0xae   : > { %545 = vmatpush2.msra.mxu1 %v431_v12  ;;  %475 = vmatprep.subr.mxu0 %v366_v13  ;;  %v411_v52 = vld [vmem:[%s1428_s13 + $0x330] sm:$0xff]  ;;  %v410_v54 = vld [vmem:[%s1428_s13 + $0x328] sm:$0xff]  ;;  %v409_v56 = vld [vmem:[%s1428_s13 + $0x320] sm:$0xff] }
  0xaf   : > { %546 = vmatprep.subr.mxu1 %v430_v14  ;;  %476 = vmatpush2.msra.mxu0 %v365_v15  ;;  %v344_v57 = vld [vmem:[%s1428_s13 + $0x118] sm:$0xff]  ;;  %v343_v59 = vld [vmem:[%s1428_s13 + $0x110] sm:$0xff]  ;;  %v342_v61 = vld [vmem:[%s1428_s13 + $0x108] sm:$0xff] }
  0xb0   : > { %547 = vmatpush2.msra.mxu1 %v429_v16  ;;  %477 = vmatprep.subr.mxu0 %v364_v17  ;;  %v408_v58 = vld [vmem:[%s1428_s13 + $0x318] sm:$0xff]  ;;  %v407_v60 = vld [vmem:[%s1428_s13 + $0x310] sm:$0xff]  ;;  %v406_v62 = vld [vmem:[%s1428_s13 + $0x308] sm:$0xff] }
  0xb1   : > { %548 = vmatprep.subr.mxu1 %v428_v18  ;;  %478 = vmatpush2.msra.mxu0 %v363_v19  ;;  %v341_v63 = vld [vmem:[%s1428_s13 + $0x100] sm:$0xff]  ;;  %v306_v0 = vld [vmem:[%s1420_s9 + $0x8] sm:$0xff]  ;;  %v308_v2 = vld [vmem:[%s1420_s9 + $0x18] sm:$0xff] }
  0xb2   : > { %549 = vmatpush2.msra.mxu1 %v427_v20  ;;  %479 = vmatprep.subr.mxu0 %v362_v21  ;;  %v405_v1 = vld [vmem:[%s1428_s13 + $0x300] sm:$0xff]  ;;  %v307_v4 = vld [vmem:[%s1420_s9 + $0x10] sm:$0xff]  ;;  %v304_v10 = vld [vmem:[#allocation2 + $0x8] sm:$0xff] }
  0xb3   : > { %550 = vmatprep.subr.mxu1 %v426_v22  ;;  %480 = vmatpush2.msra.mxu0 %v361_v23  ;;  %v305_v3 = vld [vmem:[%s1420_s9] sm:$0xff]  ;;  %v303_v6 = vld [vmem:[#allocation2] sm:$0xff] }
  0xb4   : > { %551 = vmatpush2.msra.mxu1 %v425_v24  ;;  %481 = vmatprep.subr.mxu0 %v360_v25 }
  0xb5   : > { %552 = vmatprep.subr.mxu1 %v424_v26  ;;  %482 = vmatpush2.msra.mxu0 %v359_v27 }
  0xb6   : > { %553 = vmatpush2.msra.mxu1 %v423_v28  ;;  %483 = vmatprep.subr.mxu0 %v358_v29 }
  0xb7   : > { %554 = vmatprep.subr.mxu1 %v422_v30  ;;  %484 = vmatpush2.msra.mxu0 %v357_v31 }
  0xb8   : > { %555 = vmatpush2.msra.mxu1 %v421_v32  ;;  %485 = vmatprep.subr.mxu0 %v356_v33 }
  0xb9   : > { %556 = vmatprep.subr.mxu1 %v420_v34  ;;  %486 = vmatpush2.msra.mxu0 %v355_v35 }
  0xba   : > { %557 = vmatpush2.msra.mxu1 %v419_v36  ;;  %487 = vmatprep.subr.mxu0 %v354_v37 }
  0xbb   : > { %558 = vmatprep.subr.mxu1 %v418_v38  ;;  %488 = vmatpush2.msra.mxu0 %v353_v39 }
  0xbc   : > { %559 = vmatpush2.msra.mxu1 %v417_v40  ;;  %489 = vmatprep.subr.mxu0 %v352_v41 }
  0xbd   : > { %560 = vmatprep.subr.mxu1 %v416_v42  ;;  %490 = vmatpush2.msra.mxu0 %v351_v43 }
  0xbe   : > { %561 = vmatpush2.msra.mxu1 %v415_v44  ;;  %491 = vmatprep.subr.mxu0 %v350_v45 }
  0xbf   : > { %562 = vmatprep.subr.mxu1 %v414_v46  ;;  %492 = vmatpush2.msra.mxu0 %v349_v47 }
  0xc0   : > { %563 = vmatpush2.msra.mxu1 %v413_v48  ;;  %493 = vmatprep.subr.mxu0 %v348_v49 }
  0xc1   : > { %564 = vmatprep.subr.mxu1 %v412_v50  ;;  %494 = vmatpush2.msra.mxu0 %v347_v51 }
  0xc2   : > { %565 = vmatpush2.msra.mxu1 %v411_v52  ;;  %495 = vmatprep.subr.mxu0 %v346_v53 }
  0xc3   : > { %566 = vmatprep.subr.mxu1 %v410_v54  ;;  %496 = vmatpush2.msra.mxu0 %v345_v55 }
  0xc4   : > { %567 = vmatpush2.msra.mxu1 %v409_v56  ;;  %497 = vmatprep.subr.mxu0 %v344_v57 }
  0xc5   : > { %568 = vmatprep.subr.mxu1 %v408_v58  ;;  %498 = vmatpush2.msra.mxu0 %v343_v59 }
  0xc6   : > { %569 = vmatpush2.msra.mxu1 %v407_v60  ;;  %499 = vmatprep.subr.mxu0 %v342_v61 }
  0xc7   : > { %570 = vmatprep.subr.mxu1 %v406_v62  ;;  %500 = vmatpush2.msra.mxu0 %v341_v63 }
  0xc8   : > { %501 = vmatprep.mubr.f32.mxu0 %v306_v0  ;;  %571 = vmatpush2.msra.mxu1 %v405_v1 }
  0xc9   : > { %572 = vmatprep.mubr.f32.mxu1 %v308_v2  ;;  %502 = vmatmul.mubr.f32.vlgmr.msra.gmra.mxu0 %v305_v3 }
  0xca   : > { %573 = vmatmul.mubr.f32.vlgmr.msra.gmra.mxu1 %v307_v4 }
 0x189   : > { %v503_v5 = vpop.f32.mrf.mxu0 }
 0x18a   : > { %v574_v7 = vpop.f32.mrf.mxu1 }
 0x18b   : > { %v575_v8 = vadd.f32 %v574_v7, %v503_v5  ;;  %v505_v9 = vpop.f32.mrf.mxu0 }
 0x18c   : > { %v576_v11 = vpop.f32.mrf.mxu1 }
 0x18d   : > { %v579_v12 = vadd.f32 %v575_v8, %v303_v6  ;;  %v577_v13 = vadd.f32 %v576_v11, %v505_v9  ;;  %586 = sbr.rel (%p779_p0) target bundleno = 413 (0x19d), region = 52 }
 0x18f   : > { %581 = vst [vmem:[#allocation2] sm:$0xff] %v579_v12  ;;  %v580_v14 = vadd.f32 %v577_v13, %v304_v10 }
 0x191   : > { %582 = vst [vmem:[#allocation2 + $0x8] sm:$0xff] %v580_v14 }
 0x192   : > { %v591_v15 = vlaneseq  ;;  %v589_v17 = vld [vmem:[%s1438_s29] sm:$0x3] }
 0x194   : > { %v592_v16 = vshrl.u32 %v591_v15, 7 }
 0x196   : > { %v593_v18 = vsub.s32 0, %v592_v16  ;;  %v597_v19 = vsub.s32 1, %v592_v16  ;;  %v587_v20 = vld [vmem:[#allocation2] sm:$0xff] }
 0x198   : > { %v588_v21 = vld [vmem:[#allocation2 + $0x8] sm:$0xff]  ;;  %v594_v22 = vrot.slane %v589_v17, %v593_v18  ;;  %v598_v23 = vrot.slane %v589_v17, %v597_v19 }
 0x19a   : > { %v601_v24 = vadd.f32 %v594_v22, %v587_v20  ;;  %v602_v25 = vadd.f32 %v598_v23, %v588_v21 }
 0x19c   : > { %603 = vst [vmem:[%s1445_s21] sm:$0xff] %v601_v24  ;;  %604 = vst [vmem:[%s1445_s21 + $0x8] sm:$0xff] %v602_v25 }
 0x19d PF: > { %s1692_s2 = sld [smem:[#allocation17_spill]]  ;;  %s622_s1 = sshll.u32 %s1445_s21, 4  ;;  %s623_s1 = int_to_ptr.vmem [resolvable:$true] %s622_s1 }
 0x19e   : > { %s1693_s9 = sld [smem:[#allocation23_spill]]  ;;  %s606_s7 = scalar_lea.sflag [#allocation5], %s1435_s10 }
 0x19f   : > { %s1013_s5 = scalar_lea.vmem %s623_s1, 256  ;;  %s1174_s13 = smov [#allocation9]  }
 0x1a0   : > { %p1014_p2 = scmp.ne.s32.totalorder %s623_s1, %s1013_s5  ;;  %s1017_s22 = sshll.u32 %s1174_s13, 4  ;;  %s1018_s22 = int_to_ptr.vmem [resolvable:$false] %s1017_s22 }
 0x1a1   : > { %s1019_s3 = scalar_lea.vmem %s1018_s22, 512  ;;  %p1020_p13 = scmp.lt.s32.totalorder %s623_s1, %s1018_s22 }
 0x1a2   : > { %p1015_p5 = pnand %p1014_p2, %p1395_p3  ;;  %p1021_p4 = scmp.lt.s32.totalorder %s1019_s3, %s1013_s5 }
 0x1a3   : > { %s788_s15 = sshll.u32 %s1692_s2, 8 }
 0x1a4   : > { %s620_s0 = scalar_lea.hbm %s1693_s9, %s788_s15  ;;  %p1016_p8 = pneg %p1015_p5 }
 0x1a5   : > { %p1022_p6 = por %p1021_p4, %p1020_p13 }
 0x1a7   : > { %p1023_p7 = pnand %p1022_p6, %p1016_p8 }
 0x1a9   : > { %1026 = shalt.err (!%p1023_p7)
}
 0x1aa   : > { %s1027_s29 = scalar_lea.hbm %s620_s0, 256  ;;  %s1031_s21 = scalar_lea.hbm %s1693_s9, 1024 }
 0x1ab   : > { %p1028_p11 = scmp.ne.s32.totalorder %s620_s0, %s1027_s29  ;;  %p1032_p1 = scmp.lt.s32.totalorder %s620_s0, %s1693_s9 }
 0x1ac   : > { %p1033_p9 = scmp.lt.s32.totalorder %s1031_s21, %s1027_s29 }
 0x1ad   : > { %p1029_p12 = pnand %p1028_p11, %p1395_p3 }
 0x1ae   : > { %p1034_p0 = por %p1033_p9, %p1032_p1 }
 0x1af   : > { %p1030_p10 = pneg %p1029_p12 }
 0x1b1   : > { %p1035_p2 = pnand %p1034_p0, %p1030_p10 }
 0x1b3   : > { %1038 = shalt.err (!%p1035_p2)
}
 0x1b4   : > { %795 = dma.vmem_to_hbm [thread:$0]  (%p1395_p3), %s623_s1, 256, %s620_s0, %s606_s7  }
 0x1b5 PF: > { %s1694_s2 = sld [smem:[#allocation14_spill]]  ;;  %p812_p5 = scmp.ge.s32.totalorder %s1165_s25, 2 }
 0x1b6   : > { %p1695_p8 = scmp.ne.s32.totalorder %s1685_s6, 0 }
 0x1b8   : > { %p808_p13 = pnand %p812_p5, %p1695_p8 }
 0x1ba   : > { %p809_p4 = pneg %p808_p13 }
 0x1bb   : > { %s634_s15 = sand.u32 1, %s1694_s2  }
 0x1bc   : > { %s635_s4 = scalar_lea.sflag [#allocation5], %s634_s15 }
 0x1bd   : > { %1108 = dma.done.wait (%p809_p4), %s635_s4, 256  }
 0x1be   : > { %1110 = vsyncadd (%p809_p4), %s635_s4, 4294967040  ;;  %s22_s25 = sadd.s32 1, %s1165_s25   ;;  %s1697_s12 = sld [smem:[#allocation15_spill]] }
 0x1bf   : > { %p1607_p6 = scmp.ge.s32.totalorder %s22_s25, 10   ;;  %s1698_s28 = sld [smem:[#allocation18_spill]] }
 0x1c0   : > { %s1699_s6 = sld [smem:[#allocation19_spill]]  ;;  %s1700_s13 = smov %s1121_s14 }
 0x1c1   : > { %s1701_s14 = smov %s1382_s26  ;;  %s1702_s15 = smov %s1129_s16 }
 0x1c2   : > { %s1703_s16 = smov %s1133_s17  ;;  %s1704_s17 = smov %s1300_s11 }
 0x1c3   : > { %s1705_s18 = smov %s1141_s19  ;;  %s1706_s19 = smov %s1145_s20 }
 0x1c4   : > { %s1707_s20 = smov %s1338_s27  ;;  %s1708_s21 = smov %s1157_s23 }
 0x1c5   : > { %s1709_s22 = smov %s1161_s24  ;;  %s1710_s23 = smov %s1698_s28 }
 0x1c6   : > { %s1711_s24 = smov %s1699_s6  ;;  %21 = sbr.rel (!%p1607_p6) target bundleno = 17 (0x11), region = 109 }
 0x1cb   :  { %640 = vsyncpa [#allocation4], 1 }
 0x1cc   :  { %642 = vsyncpa [#allocation4 + $0x1], 1 }
 0x1cd   :  { %643 = vsyncpa [#allocation7], 1 }
 0x1ce   :  { %645 = vsyncpa [#allocation7 + $0x1], 1 }
 0x1cf   :  { %646 = vsyncpa [#allocation5], 1 }
 0x1d0   :  { %648 = vsyncpa [#allocation5 + $0x1], 1 }

</bundles_post_ra>
